<compile_context>
chip_gen: v7x
topology: tpu7x:2x2x1
jax: 0.10.0
libtpu: 0.0.40
codegen_flags: <defaults>
</compile_context>

<pallas_src>
import math

import jax
import jax.numpy as jnp
from jax.experimental import pallas as pl
from jax.experimental.pallas import tpu as pltpu


def _mha_body(x_ref, wq_ref, bq_ref, wk_ref, bk_ref, wv_ref, bv_ref,
              wo_ref, bo_ref, wd_ref, bd_ref, pre_ref,
              out_ref, attn_ref, acc_ref):
    """One grid step = (batch block, one head).

    Computes per-head Q/K/V projections for the whole batch block (folded
    into the matmul M dim), f32 scaled-dot-product softmax, bf16 PV matmul,
    and accumulates this head's contribution to out_proj; the last head
    finalizes out_proj bias + out_dim + optional pre_data blend.
    """
    BB, S, E = x_ref.shape
    Dh = wq_ref.shape[-1]
    O = wd_ref.shape[-1]

    h = pl.program_id(1)
    last_h = pl.num_programs(1) - 1
    scale = 1.0 / math.sqrt(Dh)

    # Fold batch block into the M dim of the projection matmuls.
    # NOTE: S is assumed to be a multiple of 8 (sublane size) so the reshape
    # is layout-trivial; it still compiles otherwise, just less efficiently.
    xm = x_ref[...].reshape(BB * S, E)                       # (BB*S, E) bf16

    def proj(w_ref, b_ref):
        y = jnp.dot(xm, w_ref[...], preferred_element_type=jnp.float32)
        y = y + b_ref[...].astype(jnp.float32)
        return y.astype(jnp.bfloat16).reshape(BB, S, Dh)

    q = proj(wq_ref, bq_ref)
    k = proj(wk_ref, bk_ref)
    v = proj(wv_ref, bv_ref)

    # Scores + softmax in float32 (matches torch: half matmul, f32 scale +
    # softmax).  Exact f32 division so the returned attention weights sum to
    # 1 within f32 epsilon (NOT pl.reciprocal(approx=True)).
    # TODO(synk): mask=None path only; masked_fill(-inf) branch not wired in.
    s_ = jnp.einsum('bqd,bkd->bqk', q, k,
                    preferred_element_type=jnp.float32) * scale   # (BB,S,S) f32
    m = jnp.max(s_, axis=-1, keepdims=True)
    e = jnp.exp(s_ - m)
    l = jnp.sum(e, axis=-1, keepdims=True)
    p = e / l                                                     # softmax, f32
    attn_ref[...] = p                                             # (BB, S, S)

    # PV in bf16 (native MXU path), then fuse the head merge into out_proj
    # by accumulating this head's contribution: (P_h V_h) @ Wo[hDh:(h+1)Dh].
    oh = jnp.einsum('bqk,bkd->bqd', p.astype(jnp.bfloat16), v,
                    preferred_element_type=jnp.float32)           # (BB,S,Dh) f32
    oh = oh.reshape(BB * S, Dh).astype(jnp.bfloat16)
    partial = jnp.dot(oh, wo_ref[...],
                      preferred_element_type=jnp.float32)         # (BB*S, E) f32

    @pl.when(h == 0)
    def _():
        acc_ref[...] = jnp.zeros_like(acc_ref)

    acc_ref[...] += partial

    @pl.when(h == last_h)
    def _():
        o = (acc_ref[...] + bo_ref[...].astype(jnp.float32)).astype(jnp.bfloat16)
        o2 = (jnp.dot(o, wd_ref[...], preferred_element_type=jnp.float32)
              + bd_ref[...].astype(jnp.float32))
        if pre_ref is not None:
            pre = pre_ref[...].reshape(BB * S, O).astype(jnp.float32)
            o2 = o2 * 0.9 + pre * 0.1
        out_ref[...] = o2.astype(jnp.bfloat16).reshape(BB, S, O)


def _make_kernel(use_pre):
    if use_pre:
        def kernel(x_ref, wq, bq, wk, bk, wv, bv, wo, bo, wd, bd, pre,
                   out_ref, attn_ref, acc_ref):
            _mha_body(x_ref, wq, bq, wk, bk, wv, bv, wo, bo, wd, bd, pre,
                      out_ref, attn_ref, acc_ref)
    else:
        def kernel(x_ref, wq, bq, wk, bk, wv, bv, wo, bo, wd, bd,
                   out_ref, attn_ref, acc_ref):
            _mha_body(x_ref, wq, bq, wk, bk, wv, bv, wo, bo, wd, bd, None,
                      out_ref, attn_ref, acc_ref)
    return kernel


def multi_head_attention(x, pre_data, params, num_heads, block_b=None):
    """x: (B, S, E) bf16; pre_data: (B, S, O) bf16 or None/empty.

    Returns (out (B,S,O) bf16, attention_weights (B,H,S,S) f32).
    """
    B, S, E = x.shape
    O = params["wd"].shape[1]
    H = num_heads
    assert E % H == 0
    Dh = E // H

    use_pre = pre_data is not None and pre_data.size != 0

    if block_b is None:
        # Fold enough batch elements into one block so the projection matmuls
        # see M = BB*S rows close to an MXU tile, when B allows it.
        target = max(1, -(-128 // S))          # ceil(128 / S)
        block_b = 1
        for d in range(min(B, target), 0, -1):
            if B % d == 0:
                block_b = d
                break
    BB = block_b
    nb = B // BB

    # Head-major weight / bias views (cheap one-time XLA reshapes, NOT in-kernel).
    wq3 = params["wq"].reshape(E, H, Dh).transpose(1, 0, 2)   # (H, E, Dh)
    wk3 = params["wk"].reshape(E, H, Dh).transpose(1, 0, 2)
    wv3 = params["wv"].reshape(E, H, Dh).transpose(1, 0, 2)
    bq3 = params["bq"].reshape(H, 1, Dh)
    bk3 = params["bk"].reshape(H, 1, Dh)
    bv3 = params["bv"].reshape(H, 1, Dh)
    wo3 = params["wo"].reshape(H, Dh, E)                      # rows split by head

    def head_spec(shape):
        return pl.BlockSpec(shape, lambda b, h: (h, 0, 0))

    def full2d(shape):
        return pl.BlockSpec(shape, lambda b, h: (0, 0))

    in_specs = [
        pl.BlockSpec((BB, S, E), lambda b, h: (b, 0, 0)),     # x
        head_spec((None, E, Dh)), head_spec((None, 1, Dh)),   # wq, bq (per head)
        head_spec((None, E, Dh)), head_spec((None, 1, Dh)),   # wk, bk
        head_spec((None, E, Dh)), head_spec((None, 1, Dh)),   # wv, bv
        head_spec((None, Dh, E)),                             # wo (per-head rows)
        full2d((1, E)),                                       # bo
        full2d((E, O)), full2d((1, O)),                       # wd, bd
    ]
    inputs = [x, wq3, bq3, wk3, bk3, wv3, bv3, wo3,
              params["bo"], params["wd"], params["bd"]]
    if use_pre:
        in_specs.append(pl.BlockSpec((BB, S, O), lambda b, h: (b, 0, 0)))
        inputs.append(pre_data)

    flops = int(2 * B * S * E * (4 * E + O) + 4 * B * S * S * E)
    bytes_accessed = int(2 * B * S * E
                         + 2 * (4 * E * E + E * O + 4 * E + O)
                         + 2 * B * S * O + 4 * B * H * S * S
                         + (2 * B * S * O if use_pre else 0))
    cost = pl.CostEstimate(flops=flops,
                           transcendentals=int(B * H * S * S),
                           bytes_accessed=bytes_accessed)

    # TODO(synk): output last dims (O, S) below 128 lanes force masked stores;
    # cannot pad without changing the module's output contract.
    out, attn = pl.pallas_call(
        _make_kernel(use_pre),
        out_shape=(
            jax.ShapeDtypeStruct((B, S, O), jnp.bfloat16),
            jax.ShapeDtypeStruct((B, H, S, S), jnp.float32),
        ),
        grid=(nb, H),
        in_specs=in_specs,
        out_specs=[
            pl.BlockSpec((BB, S, O), lambda b, h: (b, 0, 0)),         # resident over h
            pl.BlockSpec((BB, None, S, S), lambda b, h: (b, h, 0, 0)),  # per-head tile
        ],
        scratch_shapes=[pltpu.VMEM((BB * S, E), jnp.float32)],        # out_proj acc
        compiler_params=pltpu.CompilerParams(
            dimension_semantics=("parallel", "arbitrary")),
        cost_estimate=cost,
    )(*inputs)

    return out, attn


def init_params(key, embed_dim, output_dim):
    """Deterministic nn.Linear-style init (uniform +-1/sqrt(fan_in)), bf16."""
    def lin(k, fan_in, shape):
        bound = 1.0 / math.sqrt(fan_in)
        return jax.random.uniform(k, shape, jnp.float32,
                                  -bound, bound).astype(jnp.bfloat16)

    ks = jax.random.split(key, 10)
    E, O = embed_dim, output_dim
    return {
        "wq": lin(ks[0], E, (E, E)), "bq": lin(ks[1], E, (1, E)),
        "wk": lin(ks[2], E, (E, E)), "bk": lin(ks[3], E, (1, E)),
        "wv": lin(ks[4], E, (E, E)), "bv": lin(ks[5], E, (1, E)),
        "wo": lin(ks[6], E, (E, E)), "bo": lin(ks[7], E, (1, E)),
        "wd": lin(ks[8], E, (E, O)), "bd": lin(ks[9], E, (1, O)),
    }


def _reference(x, pre_data, params, num_heads):
    """Plain-JAX f32 reference of the module forward (for sanity checking)."""
    B, S, E = x.shape
    H = num_heads
    Dh = E // H
    xf = x.astype(jnp.float32)
    lin = lambda t, w, b: t @ params[w].astype(jnp.float32) + params[b].astype(jnp.float32)
    q = lin(xf, "wq", "bq").reshape(B, S, H, Dh).transpose(0, 2, 1, 3)
    k = lin(xf, "wk", "bk").reshape(B, S, H, Dh).transpose(0, 2, 1, 3)
    v = lin(xf, "wv", "bv").reshape(B, S, H, Dh).transpose(0, 2, 1, 3)
    s = jnp.einsum('bhqd,bhkd->bhqk', q, k) / math.sqrt(Dh)
    p = jax.nn.softmax(s, axis=-1)
    o = jnp.einsum('bhqk,bhkd->bhqd', p, v).transpose(0, 2, 1, 3).reshape(B, S, E)
    o = o @ params["wo"].astype(jnp.float32) + params["bo"].astype(jnp.float32)
    o = o @ params["wd"].astype(jnp.float32) + params["bd"].astype(jnp.float32)
    if pre_data is not None and pre_data.size != 0:
        o = o * 0.9 + pre_data.astype(jnp.float32) * 0.1
    return o, p


if __name__ == "__main__":
    B, S, E, H, O = 2, 8, 32, 4, 16

    root = jax.random.PRNGKey(0)
    k_params, k_x, k_pre = jax.random.split(root, 3)

    params = init_params(k_params, E, O)
    x = jax.random.normal(k_x, (B, S, E), jnp.float32).astype(jnp.bfloat16)
    pre_data = jax.random.normal(k_pre, (B, S, O),
                                 jnp.float32).astype(jnp.bfloat16)

    out, attn = multi_head_attention(x, pre_data, params, num_heads=H)
    out, attn = jax.block_until_ready((out, attn))

    # also exercise the fast path that skips the pre_data DMA entirely
    out_np, attn_np = multi_head_attention(x, None, params, num_heads=H)
    out_np, attn_np = jax.block_until_ready((out_np, attn_np))

    assert out.shape == (B, S, O) and out.dtype == jnp.bfloat16
    assert attn.shape == (B, H, S, S) and attn.dtype == jnp.float32
    assert out_np.shape == (B, S, O) and attn_np.shape == (B, H, S, S)
    assert bool(jnp.all(jnp.isfinite(out.astype(jnp.float32))))
    assert bool(jnp.all(jnp.isfinite(attn)))
    # attention weights along the last axis must sum to ~1 (exact f32 division)
    assert bool(jnp.allclose(attn.sum(-1), 1.0, atol=1e-3))
    assert bool(jnp.allclose(attn_np.sum(-1), 1.0, atol=1e-3))

    # sanity check against a plain-JAX f32 reference (bf16 tolerance)
    ref_out, ref_attn = _reference(x, pre_data, params, H)
    assert bool(jnp.allclose(attn, ref_attn, atol=3e-2))
    assert bool(jnp.allclose(out.astype(jnp.float32), ref_out,
                             atol=1e-1, rtol=1e-1))

    ref_out_np, _ = _reference(x, None, params, H)
    assert bool(jnp.allclose(out_np.astype(jnp.float32), ref_out_np,
                             atol=1e-1, rtol=1e-1))

    print("KERNEL_OK")
</pallas_src>

<mosaic_0001>
module attributes {stable_mosaic.version = 11 : i64} {
  func.func @kernel(%arg0: i32, %arg1: i32, %arg2: memref<2x8x32xbf16, #tpu.memory_space<vmem>>, %arg3: memref<1x32x8xbf16, #tpu.memory_space<vmem>>, %arg4: memref<1x1x8xbf16, #tpu.memory_space<vmem>>, %arg5: memref<1x32x8xbf16, #tpu.memory_space<vmem>>, %arg6: memref<1x1x8xbf16, #tpu.memory_space<vmem>>, %arg7: memref<1x32x8xbf16, #tpu.memory_space<vmem>>, %arg8: memref<1x1x8xbf16, #tpu.memory_space<vmem>>, %arg9: memref<1x8x32xbf16, #tpu.memory_space<vmem>>, %arg10: memref<1x32xbf16, #tpu.memory_space<vmem>>, %arg11: memref<32x16xbf16, #tpu.memory_space<vmem>>, %arg12: memref<1x16xbf16, #tpu.memory_space<vmem>>, %arg13: memref<2x8x16xbf16, #tpu.memory_space<vmem>>, %arg14: memref<2x8x16xbf16, #tpu.memory_space<vmem>>, %arg15: memref<2x1x8x8xf32, #tpu.memory_space<vmem>>, %arg16: memref<16x32xf32, #tpu.memory_space<vmem>>) attributes {dimension_semantics = [#tpu.dimension_semantics<parallel>, #tpu.dimension_semantics<arbitrary>], iteration_bounds = array<i64: 1, 4>, scalar_prefetch = 0 : i64, scratch_operands = 1 : i64, tpu.core_type = #tpu.core_type<tc>, window_params = [{transform_indices = @transform_0, window_bounds = array<i64: 2, 8, 32>}, {transform_indices = @transform_1, window_bounds = array<i64: 1, 32, 8>}, {transform_indices = @transform_2, window_bounds = array<i64: 1, 1, 8>}, {transform_indices = @transform_3, window_bounds = array<i64: 1, 32, 8>}, {transform_indices = @transform_4, window_bounds = array<i64: 1, 1, 8>}, {transform_indices = @transform_5, window_bounds = array<i64: 1, 32, 8>}, {transform_indices = @transform_6, window_bounds = array<i64: 1, 1, 8>}, {transform_indices = @transform_7, window_bounds = array<i64: 1, 8, 32>}, {pipeline_mode = #tpu.pipeline_mode<synchronous>, transform_indices = @transform_8, window_bounds = array<i64: 1, 32>}, {pipeline_mode = #tpu.pipeline_mode<synchronous>, transform_indices = @transform_9, window_bounds = array<i64: 32, 16>}, {pipeline_mode = #tpu.pipeline_mode<synchronous>, transform_indices = @transform_10, window_bounds = array<i64: 1, 16>}, {transform_indices = @transform_11, window_bounds = array<i64: 2, 8, 16>}, {transform_indices = @transform_12, window_bounds = array<i64: 2, 8, 16>}, {transform_indices = @transform_13, window_bounds = array<i64: 2, 1, 8, 8>}]} {
    %c0 = arith.constant 0 : index
    %c0_0 = arith.constant 0 : index
    %c0_1 = arith.constant 0 : index
    %0 = vector.load %arg2[%c0, %c0_0, %c0_1] : memref<2x8x32xbf16, #tpu.memory_space<vmem>>, vector<2x8x32xbf16>
    %1 = vector.shape_cast %0 : vector<2x8x32xbf16> to vector<16x32xbf16>
    %c0_2 = arith.constant 0 : index
    %c0_3 = arith.constant 0 : index
    %c0_4 = arith.constant 0 : index
    %2 = vector.load %arg3[%c0_2, %c0_3, %c0_4] : memref<1x32x8xbf16, #tpu.memory_space<vmem>>, vector<1x32x8xbf16>
    %3 = vector.shape_cast %2 : vector<1x32x8xbf16> to vector<32x8xbf16>
    %cst = arith.constant dense<0.000000e+00> : vector<16x8xf32>
    %4 = tpu.matmul %1, %3, %cst {dimension_numbers = #tpu.dot_dimension_numbers<[1], [0], [0], [1], [0, 0, 1, 1], [], []>} : vector<16x32xbf16>, vector<32x8xbf16>, vector<16x8xf32> -> vector<16x8xf32>
    %c0_5 = arith.constant 0 : index
    %c0_6 = arith.constant 0 : index
    %c0_7 = arith.constant 0 : index
    %5 = vector.load %arg4[%c0_5, %c0_6, %c0_7] : memref<1x1x8xbf16, #tpu.memory_space<vmem>>, vector<1x1x8xbf16>
    %6 = vector.shape_cast %5 : vector<1x1x8xbf16> to vector<1x8xbf16>
    %7 = arith.extf %6 : vector<1x8xbf16> to vector<1x8xf32>
    %8 = vector.broadcast %7 : vector<1x8xf32> to vector<16x8xf32>
    %9 = arith.addf %4, %8 : vector<16x8xf32>
    %10 = arith.truncf %9 : vector<16x8xf32> to vector<16x8xbf16>
    %11 = vector.shape_cast %10 : vector<16x8xbf16> to vector<2x8x8xbf16>
    %c0_8 = arith.constant 0 : index
    %c0_9 = arith.constant 0 : index
    %c0_10 = arith.constant 0 : index
    %12 = vector.load %arg5[%c0_8, %c0_9, %c0_10] : memref<1x32x8xbf16, #tpu.memory_space<vmem>>, vector<1x32x8xbf16>
    %13 = vector.shape_cast %12 : vector<1x32x8xbf16> to vector<32x8xbf16>
    %cst_11 = arith.constant dense<0.000000e+00> : vector<16x8xf32>
    %14 = tpu.matmul %1, %13, %cst_11 {dimension_numbers = #tpu.dot_dimension_numbers<[1], [0], [0], [1], [0, 0, 1, 1], [], []>} : vector<16x32xbf16>, vector<32x8xbf16>, vector<16x8xf32> -> vector<16x8xf32>
    %c0_12 = arith.constant 0 : index
    %c0_13 = arith.constant 0 : index
    %c0_14 = arith.constant 0 : index
    %15 = vector.load %arg6[%c0_12, %c0_13, %c0_14] : memref<1x1x8xbf16, #tpu.memory_space<vmem>>, vector<1x1x8xbf16>
    %16 = vector.shape_cast %15 : vector<1x1x8xbf16> to vector<1x8xbf16>
    %17 = arith.extf %16 : vector<1x8xbf16> to vector<1x8xf32>
    %18 = vector.broadcast %17 : vector<1x8xf32> to vector<16x8xf32>
    %19 = arith.addf %14, %18 : vector<16x8xf32>
    %20 = arith.truncf %19 : vector<16x8xf32> to vector<16x8xbf16>
    %21 = vector.shape_cast %20 : vector<16x8xbf16> to vector<2x8x8xbf16>
    %c0_15 = arith.constant 0 : index
    %c0_16 = arith.constant 0 : index
    %c0_17 = arith.constant 0 : index
    %22 = vector.load %arg7[%c0_15, %c0_16, %c0_17] : memref<1x32x8xbf16, #tpu.memory_space<vmem>>, vector<1x32x8xbf16>
    %23 = vector.shape_cast %22 : vector<1x32x8xbf16> to vector<32x8xbf16>
    %cst_18 = arith.constant dense<0.000000e+00> : vector<16x8xf32>
    %24 = tpu.matmul %1, %23, %cst_18 {dimension_numbers = #tpu.dot_dimension_numbers<[1], [0], [0], [1], [0, 0, 1, 1], [], []>} : vector<16x32xbf16>, vector<32x8xbf16>, vector<16x8xf32> -> vector<16x8xf32>
    %c0_19 = arith.constant 0 : index
    %c0_20 = arith.constant 0 : index
    %c0_21 = arith.constant 0 : index
    %25 = vector.load %arg8[%c0_19, %c0_20, %c0_21] : memref<1x1x8xbf16, #tpu.memory_space<vmem>>, vector<1x1x8xbf16>
    %26 = vector.shape_cast %25 : vector<1x1x8xbf16> to vector<1x8xbf16>
    %27 = arith.extf %26 : vector<1x8xbf16> to vector<1x8xf32>
    %28 = vector.broadcast %27 : vector<1x8xf32> to vector<16x8xf32>
    %29 = arith.addf %24, %28 : vector<16x8xf32>
    %30 = arith.truncf %29 : vector<16x8xf32> to vector<16x8xbf16>
    %31 = vector.shape_cast %30 : vector<16x8xbf16> to vector<2x8x8xbf16>
    "tpu.trace_start"() <{level = 10 : i32, message = "bqd,bkd->bqk"}> : () -> ()
    %cst_22 = arith.constant dense<0.000000e+00> : vector<2x8x8xf32>
    %32 = tpu.matmul %11, %21, %cst_22 {dimension_numbers = #tpu.dot_dimension_numbers<[2], [2], [1], [1], [0, 0, 0, 1, 1, 1], [0], [0]>} : vector<2x8x8xbf16>, vector<2x8x8xbf16>, vector<2x8x8xf32> -> vector<2x8x8xf32>
    "tpu.trace_stop"() : () -> ()
    %cst_23 = arith.constant 0.353553385 : f32
    %33 = vector.broadcast %cst_23 : f32 to vector<2x8x8xf32>
    %34 = arith.mulf %32, %33 : vector<2x8x8xf32>
    %cst_24 = arith.constant dense<0xFF800000> : vector<2x8xf32>
    %35 = vector.multi_reduction <maximumf>, %34, %cst_24 [2] : vector<2x8x8xf32> to vector<2x8xf32>
    %36 = vector.shape_cast %35 : vector<2x8xf32> to vector<2x8x1xf32>
    %37 = vector.broadcast %36 : vector<2x8x1xf32> to vector<2x8x8xf32>
    %38 = arith.subf %34, %37 : vector<2x8x8xf32>
    %39 = math.exp %38 : vector<2x8x8xf32>
    %cst_25 = arith.constant dense<0.000000e+00> : vector<2x8xf32>
    %40 = vector.multi_reduction <add>, %39, %cst_25 [2] : vector<2x8x8xf32> to vector<2x8xf32>
    %41 = vector.shape_cast %40 : vector<2x8xf32> to vector<2x8x1xf32>
    %42 = vector.broadcast %41 : vector<2x8x1xf32> to vector<2x8x8xf32>
    %43 = arith.divf %39, %42 : vector<2x8x8xf32>
    %c0_26 = arith.constant 0 : index
    %c0_27 = arith.constant 0 : index
    %c0_28 = arith.constant 0 : index
    %c0_29 = arith.constant 0 : index
    %44 = vector.load %arg15[%c0_26, %c0_27, %c0_28, %c0_29] : memref<2x1x8x8xf32, #tpu.memory_space<vmem>>, vector<2x1x8x8xf32>
    %45 = vector.shape_cast %44 : vector<2x1x8x8xf32> to vector<2x8x8xf32>
    %46 = vector.shape_cast %43 : vector<2x8x8xf32> to vector<2x1x8x8xf32>
    tpu.vector_store %arg15[%c0_26, %c0_27, %c0_28, %c0_29], %46 {strides = array<i32>} : memref<2x1x8x8xf32, #tpu.memory_space<vmem>>, vector<2x1x8x8xf32>,
    %47 = arith.truncf %43 : vector<2x8x8xf32> to vector<2x8x8xbf16>
    "tpu.trace_start"() <{level = 10 : i32, message = "bqk,bkd->bqd"}> : () -> ()
    %cst_30 = arith.constant dense<0.000000e+00> : vector<2x8x8xf32>
    %48 = tpu.matmul %47, %31, %cst_30 {dimension_numbers = #tpu.dot_dimension_numbers<[2], [1], [1], [2], [0, 0, 0, 1, 1, 2], [0], [0]>} : vector<2x8x8xbf16>, vector<2x8x8xbf16>, vector<2x8x8xf32> -> vector<2x8x8xf32>
    "tpu.trace_stop"() : () -> ()
    %49 = vector.shape_cast %48 : vector<2x8x8xf32> to vector<16x8xf32>
    %50 = arith.truncf %49 : vector<16x8xf32> to vector<16x8xbf16>
    %c0_31 = arith.constant 0 : index
    %c0_32 = arith.constant 0 : index
    %c0_33 = arith.constant 0 : index
    %51 = vector.load %arg9[%c0_31, %c0_32, %c0_33] : memref<1x8x32xbf16, #tpu.memory_space<vmem>>, vector<1x8x32xbf16>
    %52 = vector.shape_cast %51 : vector<1x8x32xbf16> to vector<8x32xbf16>
    %cst_34 = arith.constant dense<0.000000e+00> : vector<16x32xf32>
    %53 = tpu.matmul %50, %52, %cst_34 {dimension_numbers = #tpu.dot_dimension_numbers<[1], [0], [0], [1], [0, 0, 1, 1], [], []>} : vector<16x8xbf16>, vector<8x32xbf16>, vector<16x32xf32> -> vector<16x32xf32>
    %c0_i32 = arith.constant 0 : i32
    %54 = arith.cmpi eq, %arg1, %c0_i32 : i32
    %55 = arith.extui %54 : i1 to i32
    %c0_i32_35 = arith.constant 0 : i32
    %56 = arith.cmpi ne, %55, %c0_i32_35 : i32
    scf.if %56 {
      %cst_41 = arith.constant 0.000000e+00 : f32
      %63 = vector.broadcast %cst_41 : f32 to vector<16x32xf32>
      %c0_42 = arith.constant 0 : index
      %c0_43 = arith.constant 0 : index
      %64 = vector.load %arg16[%c0_42, %c0_43] : memref<16x32xf32, #tpu.memory_space<vmem>>, vector<16x32xf32>
      tpu.vector_store %arg16[%c0_42, %c0_43], %63 {strides = array<i32>} : memref<16x32xf32, #tpu.memory_space<vmem>>, vector<16x32xf32>,
    } else {
    }
    %c0_36 = arith.constant 0 : index
    %c0_37 = arith.constant 0 : index
    %57 = vector.load %arg16[%c0_36, %c0_37] : memref<16x32xf32, #tpu.memory_space<vmem>>, vector<16x32xf32>
    %58 = arith.addf %57, %53 : vector<16x32xf32>
    %c0_38 = arith.constant 0 : index
    %c0_39 = arith.constant 0 : index
    %59 = vector.load %arg16[%c0_38, %c0_39] : memref<16x32xf32, #tpu.memory_space<vmem>>, vector<16x32xf32>
    tpu.vector_store %arg16[%c0_38, %c0_39], %58 {strides = array<i32>} : memref<16x32xf32, #tpu.memory_space<vmem>>, vector<16x32xf32>,
    %c3_i32 = arith.constant 3 : i32
    %60 = arith.cmpi eq, %arg1, %c3_i32 : i32
    %61 = arith.extui %60 : i1 to i32
    %c0_i32_40 = arith.constant 0 : i32
    %62 = arith.cmpi ne, %61, %c0_i32_40 : i32
    scf.if %62 {
      %c0_41 = arith.constant 0 : index
      %c0_42 = arith.constant 0 : index
      %63 = vector.load %arg16[%c0_41, %c0_42] : memref<16x32xf32, #tpu.memory_space<vmem>>, vector<16x32xf32>
      %c0_43 = arith.constant 0 : index
      %c0_44 = arith.constant 0 : index
      %64 = vector.load %arg10[%c0_43, %c0_44] : memref<1x32xbf16, #tpu.memory_space<vmem>>, vector<1x32xbf16>
      %65 = arith.extf %64 : vector<1x32xbf16> to vector<1x32xf32>
      %66 = vector.broadcast %65 : vector<1x32xf32> to vector<16x32xf32>
      %67 = arith.addf %63, %66 : vector<16x32xf32>
      %68 = arith.truncf %67 : vector<16x32xf32> to vector<16x32xbf16>
      %c0_45 = arith.constant 0 : index
      %c0_46 = arith.constant 0 : index
      %69 = vector.load %arg11[%c0_45, %c0_46] : memref<32x16xbf16, #tpu.memory_space<vmem>>, vector<32x16xbf16>
      %cst_47 = arith.constant dense<0.000000e+00> : vector<16x16xf32>
      %70 = tpu.matmul %68, %69, %cst_47 {dimension_numbers = #tpu.dot_dimension_numbers<[1], [0], [0], [1], [0, 0, 1, 1], [], []>} : vector<16x32xbf16>, vector<32x16xbf16>, vector<16x16xf32> -> vector<16x16xf32>
      %c0_48 = arith.constant 0 : index
      %c0_49 = arith.constant 0 : index
      %71 = vector.load %arg12[%c0_48, %c0_49] : memref<1x16xbf16, #tpu.memory_space<vmem>>, vector<1x16xbf16>
      %72 = arith.extf %71 : vector<1x16xbf16> to vector<1x16xf32>
      %73 = vector.broadcast %72 : vector<1x16xf32> to vector<16x16xf32>
      %74 = arith.addf %70, %73 : vector<16x16xf32>
      %c0_50 = arith.constant 0 : index
      %c0_51 = arith.constant 0 : index
      %c0_52 = arith.constant 0 : index
      %75 = vector.load %arg13[%c0_50, %c0_51, %c0_52] : memref<2x8x16xbf16, #tpu.memory_space<vmem>>, vector<2x8x16xbf16>
      %76 = vector.shape_cast %75 : vector<2x8x16xbf16> to vector<16x16xbf16>
      %77 = arith.extf %76 : vector<16x16xbf16> to vector<16x16xf32>
      %cst_53 = arith.constant 0.899999976 : f32
      %78 = vector.broadcast %cst_53 : f32 to vector<16x16xf32>
      %79 = arith.mulf %74, %78 : vector<16x16xf32>
      %cst_54 = arith.constant 1.000000e-01 : f32
      %80 = vector.broadcast %cst_54 : f32 to vector<16x16xf32>
      %81 = arith.mulf %77, %80 : vector<16x16xf32>
      %82 = arith.addf %79, %81 : vector<16x16xf32>
      %83 = arith.truncf %82 : vector<16x16xf32> to vector<16x16xbf16>
      %84 = vector.shape_cast %83 : vector<16x16xbf16> to vector<2x8x16xbf16>
      %c0_55 = arith.constant 0 : index
      %c0_56 = arith.constant 0 : index
      %c0_57 = arith.constant 0 : index
      %85 = vector.load %arg14[%c0_55, %c0_56, %c0_57] : memref<2x8x16xbf16, #tpu.memory_space<vmem>>, vector<2x8x16xbf16>
      tpu.vector_store %arg14[%c0_55, %c0_56, %c0_57], %84 {strides = array<i32>} : memref<2x8x16xbf16, #tpu.memory_space<vmem>>, vector<2x8x16xbf16>,
    } else {
    }
    return
  }
  func.func @transform_0(%arg0: i32, %arg1: i32) -> (i32, i32, i32) {
    %c0_i32 = arith.constant 0 : i32
    %c0_i32_0 = arith.constant 0 : i32
    %c0_i32_1 = arith.constant 0 : i32
    return %arg0, %c0_i32, %c0_i32_0 : i32, i32, i32
  }
  func.func @transform_1(%arg0: i32, %arg1: i32) -> (i32, i32, i32) {
    %c0_i32 = arith.constant 0 : i32
    %c0_i32_0 = arith.constant 0 : i32
    %c0_i32_1 = arith.constant 0 : i32
    return %arg1, %c0_i32, %c0_i32_0 : i32, i32, i32
  }
  func.func @transform_2(%arg0: i32, %arg1: i32) -> (i32, i32, i32) {
    %c0_i32 = arith.constant 0 : i32
    %c0_i32_0 = arith.constant 0 : i32
    %c0_i32_1 = arith.constant 0 : i32
    return %arg1, %c0_i32, %c0_i32_0 : i32, i32, i32
  }
  func.func @transform_3(%arg0: i32, %arg1: i32) -> (i32, i32, i32) {
    %c0_i32 = arith.constant 0 : i32
    %c0_i32_0 = arith.constant 0 : i32
    %c0_i32_1 = arith.constant 0 : i32
    return %arg1, %c0_i32, %c0_i32_0 : i32, i32, i32
  }
  func.func @transform_4(%arg0: i32, %arg1: i32) -> (i32, i32, i32) {
    %c0_i32 = arith.constant 0 : i32
    %c0_i32_0 = arith.constant 0 : i32
    %c0_i32_1 = arith.constant 0 : i32
    return %arg1, %c0_i32, %c0_i32_0 : i32, i32, i32
  }
  func.func @transform_5(%arg0: i32, %arg1: i32) -> (i32, i32, i32) {
    %c0_i32 = arith.constant 0 : i32
    %c0_i32_0 = arith.constant 0 : i32
    %c0_i32_1 = arith.constant 0 : i32
    return %arg1, %c0_i32, %c0_i32_0 : i32, i32, i32
  }
  func.func @transform_6(%arg0: i32, %arg1: i32) -> (i32, i32, i32) {
    %c0_i32 = arith.constant 0 : i32
    %c0_i32_0 = arith.constant 0 : i32
    %c0_i32_1 = arith.constant 0 : i32
    return %arg1, %c0_i32, %c0_i32_0 : i32, i32, i32
  }
  func.func @transform_7(%arg0: i32, %arg1: i32) -> (i32, i32, i32) {
    %c0_i32 = arith.constant 0 : i32
    %c0_i32_0 = arith.constant 0 : i32
    %c0_i32_1 = arith.constant 0 : i32
    return %arg1, %c0_i32, %c0_i32_0 : i32, i32, i32
  }
  func.func @transform_8(%arg0: i32, %arg1: i32) -> (i32, i32) {
    %c0_i32 = arith.constant 0 : i32
    %c0_i32_0 = arith.constant 0 : i32
    %c0_i32_1 = arith.constant 0 : i32
    return %c0_i32, %c0_i32_0 : i32, i32
  }
  func.func @transform_9(%arg0: i32, %arg1: i32) -> (i32, i32) {
    %c0_i32 = arith.constant 0 : i32
    %c0_i32_0 = arith.constant 0 : i32
    %c0_i32_1 = arith.constant 0 : i32
    return %c0_i32, %c0_i32_0 : i32, i32
  }
  func.func @transform_10(%arg0: i32, %arg1: i32) -> (i32, i32) {
    %c0_i32 = arith.constant 0 : i32
    %c0_i32_0 = arith.constant 0 : i32
    %c0_i32_1 = arith.constant 0 : i32
    return %c0_i32, %c0_i32_0 : i32, i32
  }
  func.func @transform_11(%arg0: i32, %arg1: i32) -> (i32, i32, i32) {
    %c0_i32 = arith.constant 0 : i32
    %c0_i32_0 = arith.constant 0 : i32
    %c0_i32_1 = arith.constant 0 : i32
    return %arg0, %c0_i32, %c0_i32_0 : i32, i32, i32
  }
  func.func @transform_12(%arg0: i32, %arg1: i32) -> (i32, i32, i32) {
    %c0_i32 = arith.constant 0 : i32
    %c0_i32_0 = arith.constant 0 : i32
    %c0_i32_1 = arith.constant 0 : i32
    return %arg0, %c0_i32, %c0_i32_0 : i32, i32, i32
  }
  func.func @transform_13(%arg0: i32, %arg1: i32) -> (i32, i32, i32, i32) {
    %c0_i32 = arith.constant 0 : i32
    %c0_i32_0 = arith.constant 0 : i32
    %c0_i32_1 = arith.constant 0 : i32
    return %arg0, %arg1, %c0_i32, %c0_i32_0 : i32, i32, i32, i32
  }
}

</mosaic_0001>

<bundles_post_ra>
// kernel: tpu_custom_call.1
= control target key start
LH: loop header
LB: loop body
LE: loop exit
PB: predicated region body
PF: predicated region fallthrough
CT: control target
= control target key end

     0   :  { %s2094_s0 = inlined_call_operand.vmem [shape: bf16[2,8,32], index: 0, kind: input, shape index: {}]   ;;  %s2095_s1 = inlined_call_operand.vmem [shape: bf16[4,32,8], index: 1, kind: input, shape index: {}]   ;;  %s2096_s2 = inlined_call_operand.vmem [shape: bf16[4,1,8], index: 2, kind: input, shape index: {}]   ;;  %s2097_s3 = inlined_call_operand.vmem [shape: bf16[4,32,8], index: 3, kind: input, shape index: {}]   ;;  %s2098_s4 = inlined_call_operand.vmem [shape: bf16[4,1,8], index: 4, kind: input, shape index: {}]   ;;  %s2099_s5 = inlined_call_operand.vmem [shape: bf16[4,32,8], index: 5, kind: input, shape index: {}]   ;;  %s2100_s6 = inlined_call_operand.vmem [shape: bf16[4,1,8], index: 6, kind: input, shape index: {}]   ;;  %s2101_s7 = inlined_call_operand.vmem [shape: bf16[4,8,32], index: 7, kind: input, shape index: {}]   ;;  %s2102_s8 = inlined_call_operand.vmem [shape: bf16[1,32], index: 8, kind: input, shape index: {}]   ;;  %s2103_s9 = inlined_call_operand.vmem [shape: bf16[32,16], index: 9, kind: input, shape index: {}]   ;;  %s2104_s10 = inlined_call_operand.vmem [shape: bf16[1,16], index: 10, kind: input, shape index: {}]   ;;  %s2105_s11 = inlined_call_operand.vmem [shape: bf16[2,8,16], index: 11, kind: input, shape index: {}]   ;;  %s2106_s12 = inlined_call_operand.hbm [shape: bf16[2,8,16], index: 12, kind: output, shape index: {0}]   ;;  %s2107_s13 = inlined_call_operand.hbm [shape: f32[2,4,8,8], index: 13, kind: output, shape index: {1}]  }
   0x1   :  { %2115 = sst [smem:[#allocation16_spill]] %s2094_s0 }
   0x2   :  { %19 = vsyncpa [#allocation4], 0 }
   0x3   :  { %20 = vsyncpa [#allocation6], 0 }
   0x4   :  { %22 = vsyncpa [#allocation6 + $0x1], 0  ;;  %s1839_s25 = smov 0   ;;  %s1841_s26 = smov 0  }
   0x5   :  { %s1843_s27 = smov 0   ;;  %s1845_s28 = smov 0  }
   0x6   :  { %s1847_s29 = smov 0   ;;  %s1849_s30 = smov 0  }
   0x7 LB: > { %2116 = sst [smem:[#allocation9_spill]] %s1735_s25  ;;  %s1410_s14 = sadd.s32 4294967295, %s1755_s30   ;;  %s1755_s30 = sphi %s1849_s30, %s28_s30   ;;  %s1751_s29 = sphi %s1847_s29, %s2133_s29   ;;  %s1747_s28 = sphi %s1845_s28, %s2132_s28   ;;  %s1743_s27 = sphi %s1843_s27, %s2131_s27   ;;  %s1739_s26 = sphi %s1841_s26, %s2135_s26   ;;  %s1735_s25 = sphi %s1839_s25, %s2134_s25  }
   0x8   : > { %2117 = sst [smem:[#allocation10_spill]] %s1743_s27  ;;  %s1411_s15 = sadd.s32 4294967294, %s1755_s30  }
   0x9   : > { %2118 = sst [smem:[#allocation11_spill]] %s1751_s29  ;;  %s37_s16 = sadd.s32 1, %s1751_s29 }
   0xa   : > { %2119 = sst [smem:[#allocation12_spill]] %s1755_s30  ;;  %s372_s17 = sadd.s32 1, %s1743_s27 }
   0xb   : > { %p38_p0 = scmp.ge.s32.totalorder %s37_s16, 4  ;;  %p382_p1 = scmp.ne.s32.totalorder %s1743_s27, %s1739_s26 }
   0xc   : > { %p1875_p2 = scmp.eq.s32.totalorder %s1410_s14, 3  ;;  %p388_p3 = scmp.ne.s32.totalorder %s1739_s26, %s1735_s25 }
   0xd   : > { %s2137_s16 = smov (%p38_p0, %s37_s16), 0  ;;  %p389_p5 = scmp.eq.s32.totalorder %s1411_s15, 3 }
   0xe   : > { %2121 = sst [smem:[#allocation13_spill]] %s2137_s16  ;;  %p1885_p4 = por %p1875_p2, %p382_p1 }
   0xf   : > { %s368_s20 = ssub.s32 %s1751_s29, %s2137_s16  ;;  %p1416_p6 = scmp.ge.s32.totalorder %s1755_s30, 1 }
  0x10   : > { %p370_p7 = scmp.eq.s32.totalorder %s368_s20, 0  ;;  %p1892_p8 = por %p389_p5, %p388_p3 }
  0x11   : > { %p483_p9 = scmp.lt.s32.totalorder %s1755_s30, 5 }
  0x12   : > { %s2123_s21 = scalar_select %p1892_p8, 1, 0 }
  0x13   : > { %s1898_s22 = scalar_select %p370_p7, %s1743_s27, %s372_s17  }
  0x14   : > { %2124 = sst [smem:[#allocation14_spill]] %s2123_s21  ;;  %p484_p10 = pnand %p1416_p6, %p483_p9 }
  0x15   : > { %2125 = sst [smem:[#allocation15_spill]] %s1898_s22  ;;  %p566_p11 = scmp.lt.s32.totalorder (!%p484_p10), %s1747_s28, 3  ;;  %v1757_v0 = vmov (!%p484_p10), 0.0   ;;  %vm1758_vm0 = vmmov (!%p484_p10), 0   ;;  %vm632_vm1 = vcmask (!%p484_p10), 261120   ;;  %v611_v8 = vlaneseq (!%p484_p10) }
  0x16   : > { %487 = sbr.rel (%p484_p10) target bundleno = 1518 (0x5ee), region = 68  ;;  %1504 = vmatprep.subr.bf16.mxu1 (!%p484_p10), %v1757_v0  ;;  %1496 = vmatprep.subr.bf16.mxu0 (!%p484_p10), %v1757_v0  ;;  %s2126_s0 = sld [smem:[#allocation16_spill]] (!%p484_p10)  ;;  %vm821_vm2 = vcmask (!%p484_p10), 64512   ;;  %vm945_vm3 = vcmask (!%p484_p10), 1043456  }
  0x17   : > { %1508 = vmatprep.mubr.msk.bf16.mxu1 (!%p484_p10), %vm1758_vm0, %v1757_v0  ;;  %1500 = vmatprep.mubr.msk.bf16.mxu0 (!%p484_p10), %vm1758_vm0, %v1757_v0  ;;  %v612_v9 = vshrl.u32 (!%p484_p10), %v611_v8, 7  ;;  %s557_s15 = sand.u32 (!%p484_p10), 1, %s1739_s26   ;;  %p1446_p12 = scmp.ne.s32.totalorder (!%p484_p10), %s1747_s28, 0 }
  0x19   : > { %v1946_v11 = vsub.s32 (!%p484_p10), 0, %v612_v9 }
  0x1c   : > { %v1633_v5 = vld [vmem:[%s2126_s0] sm:$0xff] (!%p484_p10)  }
  0x1d   : > { %s1904_s23 = scalar_select %p566_p11, %s1747_s28, 3 }
  0x1f   : > { %s1459_s24 = sshll.u32 %s1904_s23, 4  ;;  %s589_s14 = scalar_lea.vmem %s2100_s6, %s1904_s23 }
  0x20   : > { %s578_s17 = scalar_lea.vmem %s2097_s3, %s1459_s24  ;;  %s570_s29 = scalar_lea.vmem %s2095_s1, %s1459_s24  ;;  %v756_v17 = vld [vmem:[%s589_s14] sm:$0x1] }
  0x21   : > { %v1630_v1 = vld [vmem:[%s578_s17] sm:$0xff]   ;;  %v1631_v2 = vld [vmem:[%s578_s17 + $0x8] sm:$0xff]   ;;  %s586_s21 = scalar_lea.vmem %s2099_s5, %s1459_s24  ;;  %v757_v27 = vunpack.c.l.bf16 %v756_v17  ;;  %s1417_s17 = sshll.u32 %s557_s15, 4 }
  0x22   : > { %1505 = vmatpush3.bf16.msra.mxu1 %v1630_v1  ;;  %v1632_v3 = vld [vmem:[%s570_s29] sm:$0xff]   ;;  %v1634_v4 = vld [vmem:[%s570_s29 + $0x8] sm:$0xff]   ;;  %s581_s29 = scalar_lea.vmem %s2098_s4, %s1904_s23  ;;  %s1975_s20 = scalar_lea.vmem [#allocation5], %s1417_s17 }
  0x23   : > { %1506 = vmatprep.subr.bf16.mxu1 %v1757_v0  ;;  %1497 = vmatpush3.bf16.msra.mxu0 %v1632_v3  ;;  %v1635_v6 = vld [vmem:[%s586_s21] sm:$0xff]   ;;  %v1636_v7 = vld [vmem:[%s586_s21 + $0x8] sm:$0xff]   ;;  %s573_s21 = scalar_lea.vmem %s2096_s2, %s1904_s23  ;;  %v761_v34 = vrot.slane %v757_v27, %v1946_v11  ;;  %s1424_s25 = sshll.u32 %s1904_s23, 2 }
  0x24   : > { %1498 = vmatprep.subr.bf16.mxu0 %v1757_v0  ;;  %v687_v10 = vld [vmem:[%s581_s29] sm:$0x1]  ;;  %s593_s30 = scalar_lea.vmem %s2101_s7, %s1424_s25 }
  0x25   : > { %v688_v12 = vunpack.c.l.bf16 %v687_v10  ;;  %v609_v13 = vld [vmem:[%s573_s21] sm:$0x1] }
  0x26   : > { %1507 = vmatpush3.bf16.msra.mxu1 %v1631_v2  ;;  %v610_v15 = vunpack.c.l.bf16 %v609_v13 }
  0x27   : > { %1520 = vmatprep.subr.bf16.mxu1 %v1757_v0  ;;  %1499 = vmatpush3.bf16.msra.mxu0 %v1634_v4  ;;  %v692_v14 = vrot.slane %v688_v12, %v1946_v11 }
  0x28   : > { %1512 = vmatprep.subr.bf16.mxu0 %v1757_v0  ;;  %v614_v20 = vrot.slane %v610_v15, %v1946_v11 }
  0x29   : > { %1509 = vmatmul.mubr.msk.bf16.vlgmr.msra.gmra.mrb[0].mxu1 %vm632_vm1, %v1633_v5 }
  0x2a   : > { %1522 = vmatprep.mubr.msk.bf16.mxu1 %vm1758_vm0, %v1757_v0  ;;  %1501 = vmatmul.mubr.msk.bf16.vlgmr.msra.gmra.mrb[0].mxu0 %vm632_vm1, %v1633_v5 }
  0x2b   : > { %1513 = vmatpush3.bf16.msra.mxu0 %v1635_v6  ;;  %1516 = vmatprep.mubr.msk.bf16.mxu0 %vm1758_vm0, %v1757_v0 }
  0x2c   : > { %1514 = vmatprep.subr.bf16.mxu0 %v1757_v0 }
  0x2f   : > { %1515 = vmatpush3.bf16.msra.mxu0 %v1636_v7 }
  0x30   : > { %1526 = vmatprep.subr.bf16.mxu0 %v1757_v0 }
  0x32   : > { %1517 = vmatmul.mubr.msk.bf16.vlgmr.msra.gmra.mrb[4].mxu0 %vm632_vm1, %v1633_v5 }
  0x33   : > { %1528 = vmatprep.mubr.msk.bf16.mxu0 %vm1758_vm0, %v1757_v0 }
  0xfc   : > { %v739_v16 = vpop.f32.mrb[0].mxu1 }
  0xfd   : > { %v740_v18 = vadd.f32 %v739_v16, %v692_v14  ;;  %v1510_v19 = vpop.f32.mrb[1].mxu1  ;;  %v670_v22 = vpop.f32.mrb[0].mxu0  ;;  %v1036_v16 = vld [vmem:[%s593_s30] sm:$0xf] }
  0xfe   : > { %v742_v21 = vpop.f32.mrb[2].mxu1  ;;  %v1502_v26 = vpop.f32.mrb[1].mxu0  ;;  %v671_v31 = vadd.f32 %v670_v22, %v614_v20  ;;  %v1041_v17 = vsel %vm945_vm3, %v1036_v16, 0 }
  0xff   : > { %v1464_v23 = vpack.c.bf16 %v740_v18, %v740_v18  ;;  %v743_v24 = vadd.f32 %v742_v21, %v692_v14  ;;  %v1511_v25 = vpop.f32.mrb[3].mxu1  ;;  %v673_v28 = vpop.f32.mrb[2].mxu0 }
 0x100   : > { %v1503_v32 = vpop.f32.mrb[3].mxu0  ;;  %v1462_v35 = vpack.c.bf16 %v671_v31, %v671_v31  ;;  %v674_v36 = vadd.f32 %v673_v28, %v614_v20 }
 0x101   : > { %v826_v29 = vsel %vm821_vm2, %v1464_v23, 0  ;;  %v1465_v30 = vpack.c.bf16 %v743_v24, %v743_v24 }
 0x102   : > { %1521 = vmatpush3.bf16.xpose.msra.mxu1 %v826_v29  ;;  %v1463_v41 = vpack.c.bf16 %v674_v36, %v674_v36 }
 0x103   : > { %v872_v33 = vsel %vm821_vm2, %v1465_v30, 0  ;;  %1532 = vmatprep.subr.bf16.mxu1 %v1757_v0  ;;  %v1759_v30 = vmov (!%p1446_p12), 0.0  }
 0x104   : > { %1527 = vmatpush3.bf16.xpose.msra.mxu0 %v872_v33  ;;  %1088 = vst.msk [vmem:[#allocation2] sm:$0xff] (!%p1446_p12), %vm632_vm1, %v1759_v30  ;;  %1089 = vst.msk [vmem:[#allocation2 + $0x8] sm:$0xff] (!%p1446_p12), %vm632_vm1, %v1759_v30 }
 0x105   : > { %1538 = vmatprep.subr.bf16.mxu0 %v1757_v0  ;;  %v808_v37 = vpop.f32.mrb[4].mxu0 }
 0x106   : > { %v809_v38 = vadd.f32 %v808_v37, %v761_v34  ;;  %v1518_v39 = vpop.f32.mrb[5].mxu0 }
 0x107   : > { %v811_v40 = vpop.f32.mrb[6].mxu0 }
 0x108   : > { %v1466_v42 = vpack.c.bf16 %v809_v38, %v809_v38  ;;  %v812_v43 = vadd.f32 %v811_v40, %v761_v34  ;;  %v1519_v44 = vpop.f32.mrb[7].mxu0 }
 0x109   : > { %1523 = vmatmul.mubr.msk.bf16.vlgmr.msra.gmra.mrb[4].mxu1 %vm821_vm2, %v1462_v35 }
 0x10a   : > { %1534 = vmatprep.mubr.msk.bf16.mxu1 %vm1758_vm0, %v1757_v0  ;;  %v947_v45 = vsel %vm945_vm3, %v1466_v42, 0  ;;  %v1467_v46 = vpack.c.bf16 %v812_v43, %v812_v43 }
 0x10b   : > { %1529 = vmatmul.mubr.msk.bf16.vlgmr.msra.gmra.mrb[8].mxu0 %vm821_vm2, %v1463_v41  ;;  %1533 = vmatpush3.bf16.msra.mxu1 %v947_v45 }
 0x10c   : > { %1540 = vmatprep.mubr.msk.bf16.mxu0 %vm1758_vm0, %v1757_v0  ;;  %v993_v47 = vsel %vm945_vm3, %v1467_v46, 0  ;;  %1544 = vmatprep.subr.bf16.mxu1 %v1757_v0 }
 0x10d   : > { %1539 = vmatpush3.bf16.msra.mxu0 %v993_v47 }
 0x1dc   : > { %v862_v48 = vpop.f32.mrb[4].mxu1 }
 0x1dd   : > { %v914_v49 = vmul.f32 0.35355338, %v862_v48  ;;  %v1524_v50 = vpop.f32.mrb[5].mxu1 }
 0x1de   : > { %v865_v51 = vpop.f32.mrb[6].mxu1  ;;  %v908_v52 = vpop.f32.mrb[8].mxu0 }
 0x1df   : > { %v915_v53 = vmul.f32 0.35355338, %v908_v52  ;;  %v1525_v54 = vpop.f32.mrb[7].mxu1  ;;  %v1530_v55 = vpop.f32.mrb[9].mxu0  ;;  %v916_v56 = vsel %vm821_vm2, %v914_v49, -inf }
 0x1e0   : > { %917 = vmax.xlane.f32.xlu0 %v916_v56  ;;  %v911_v57 = vpop.f32.mrb[10].mxu0 }
 0x1e1   : > { %v1531_v58 = vpop.f32.mrb[11].mxu0  ;;  %v919_v59 = vsel %vm821_vm2, %v915_v53, -inf }
 0x1e4   : > { %920 = vmax.xlane.f32.xlu0 %v919_v59 }
 0x26d   : > { %v918_v60 = vpop.xlane.xlu0 %917 }
 0x26e   : > { %v922_v61 = vsub.f32 %v914_v49, %v918_v60 }
 0x270   : > { %v924_v62 = vmul.f32 1.442695, %v922_v61 }
 0x271   : > { %v921_v63 = vpop.xlane.xlu0 %920 }
 0x272   : > { %1637 = vpow2.f32 %v924_v62  ;;  %v923_v1 = vsub.f32 %v915_v53, %v921_v63 }
 0x274   : > { %v926_v2 = vmul.f32 1.442695, %v923_v1 }
 0x276   : > { %1639 = vpow2.f32 %v926_v2 }
 0x27c   : > { %v1638_v3 = vpop.eup %1637 }
 0x27d   : > { %v928_v4 = vsel %vm821_vm2, %v1638_v3, 0.0 }
 0x27e   : > { %929 = vadd.xlane.f32.xlu1 %v928_v4 }
 0x280   : > { %v1640_v5 = vpop.eup %1639 }
 0x281   : > { %v931_v6 = vsel %vm821_vm2, %v1640_v5, 0.0 }
 0x282   : > { %932 = vadd.xlane.f32.xlu1 %v931_v6 }
 0x30b   : > { %v930_v7 = vpop.xlane.xlu1 %929 }
 0x30c   : > { %1641 = vrcp.f32 %v930_v7 }
 0x30f   : > { %v933_v8 = vpop.xlane.xlu1 %932 }
 0x310   : > { %1643 = vrcp.f32 %v933_v8 }
 0x316   : > { %v1642_v9 = vpop.eup %1641 }
 0x317   : > { %v935_v10 = vmul.f32 %v1642_v9, %v1638_v3 }
 0x319   : > { %938 = vst.msk [vmem:[%s1975_s20] sm:$0xff] %vm821_vm2, %v935_v10  ;;  %v940_v12 = vpack.c.bf16 %v935_v10, %v935_v10 }
 0x31a   : > { %v1644_v13 = vpop.eup %1643 }
 0x31b   : > { %v937_v14 = vmul.f32 %v1644_v13, %v1640_v5  ;;  %1535 = vmatmul.mubr.msk.bf16.vlgmr.msra.gmra.mrb[8].mxu1 %vm821_vm2, %v940_v12 }
 0x31c   : > { %1546 = vmatprep.mubr.msk.bf16.mxu1 %vm1758_vm0, %v1757_v0  ;;  %1545 = vmatpush3.bf16.msra.mxu1 %v1041_v17 }
 0x31d   : > { %939 = vst.msk [vmem:[%s1975_s20 + $0x8] sm:$0xff] %vm821_vm2, %v937_v14  ;;  %v941_v15 = vpack.c.bf16 %v937_v14, %v937_v14 }
 0x31f   : > { %1541 = vmatmul.mubr.msk.bf16.vlgmr.msra.gmra.mrb[12].mxu0 %vm821_vm2, %v941_v15 }
 0x3ee   : > { %v983_v18 = vpop.f32.mrb[8].mxu1 }
 0x3ef   : > { %v1536_v19 = vpop.f32.mrb[9].mxu1 }
 0x3f0   : > { %v986_v20 = vpop.f32.mrb[10].mxu1 }
 0x3f1   : > { %v1537_v21 = vpop.f32.mrb[11].mxu1 }
 0x3f2   : > { %v1029_v22 = vpop.f32.mrb[12].mxu0 }
 0x3f3   : > { %v1035_v0 = vpack.c.bf16 %v1029_v22, %v983_v18  ;;  %v1542_v23 = vpop.f32.mrb[13].mxu0 }
 0x3f4   : > { %v1032_v24 = vpop.f32.mrb[14].mxu0 }
 0x3f5   : > { %v1543_v25 = vpop.f32.mrb[15].mxu0  ;;  %1547 = vmatmul.mubr.msk.bf16.vlgmr.msra.gmra.mrb[12].mxu1 %vm821_vm2, %v1035_v0 }
 0x4c5   : > { %1087 = sbr.rel (%p1446_p12) target bundleno = 1228 (0x4cc), region = 72 }
 0x4c8   : > { %v1077_v26 = vpop.f32.mrb[12].mxu1 }
 0x4c9   : > { %v1548_v27 = vpop.f32.mrb[13].mxu1 }
 0x4ca   : > { %v1080_v28 = vpop.f32.mrb[14].mxu1 }
 0x4cb   : > { %v1549_v29 = vpop.f32.mrb[15].mxu1 }
 0x4cc PF: > { %v1090_v31 = vld [vmem:[#allocation2] sm:$0xff]  ;;  %v1091_v32 = vld [vmem:[#allocation2 + $0x8] sm:$0xff]  ;;  %p1447_p13 = scmp.ne.s32.totalorder %s1747_s28, 3 }
 0x4cd   : > { %v1092_v33 = vadd.f32 %v1090_v31, %v1077_v26  ;;  %v1093_v34 = vadd.f32 %v1091_v32, %v1080_v28  ;;  %v1645_v35 = vld [vmem:[%s2103_s9] sm:$0xff] (!%p1447_p13)   ;;  %v1760_v36 = vmov (!%p1447_p13), 0.0   ;;  %v1646_v37 = vld [vmem:[%s2103_s9 + $0x8] sm:$0xff] (!%p1447_p13)   ;;  %vm1761_vm4 = vmmov (!%p1447_p13), 0  }
 0x4ce   : > { %1099 = sbr.rel (%p1447_p13) target bundleno = 1466 (0x5ba), region = 76  ;;  %1550 = vmatprep.subr.bf16.mxu0 (!%p1447_p13), %v1760_v36  ;;  %1554 = vmatprep.mubr.msk.bf16.mxu0 (!%p1447_p13), %vm1761_vm4, %v1760_v36  ;;  %v1102_v38 = vld [vmem:[%s2102_s8] sm:$0x1] (!%p1447_p13)  ;;  %vm1195_vm5 = vcmask (!%p1447_p13), 125952  }
 0x4cf   : > { %1094 = vst.msk [vmem:[#allocation2] sm:$0xff] %vm632_vm1, %v1092_v33  ;;  %1095 = vst.msk [vmem:[#allocation2 + $0x8] sm:$0xff] %vm632_vm1, %v1093_v34  ;;  %1551 = vmatpush3.bf16.msra.mxu0 (!%p1447_p13), %v1645_v35  ;;  %v1103_v39 = vunpack.c.l.bf16 (!%p1447_p13), %v1102_v38  ;;  %v1115_v46 = vld [vmem:[%s2104_s10] sm:$0x1] (!%p1447_p13) }
 0x4d0   : > { %1552 = vmatprep.subr.bf16.mxu0 (!%p1447_p13), %v1760_v36  ;;  %v1116_v47 = vunpack.c.l.bf16 (!%p1447_p13), %v1115_v46  ;;  %v1471_v48 = vld [vmem:[%s2105_s11] sm:$0xff] (!%p1447_p13)  }
 0x4d1   : > { %v1107_v42 = vrot.slane (!%p1447_p13), %v1103_v39, %v1946_v11  ;;  %v1472_v50 = vunpack.c.l.bf16 (!%p1447_p13), %v1471_v48  ;;  %v1473_v51 = vunpack.c.h.bf16 (!%p1447_p13), %v1471_v48 }
 0x4d2   : > { %v1120_v49 = vrot.slane (!%p1447_p13), %v1116_v47, %v1946_v11 }
 0x4d3   : > { %1553 = vmatpush3.bf16.msra.mxu0 (!%p1447_p13), %v1646_v37  ;;  %v1183_v54 = vmul.f32 (!%p1447_p13), 0.1, %v1472_v50  ;;  %v1184_v59 = vmul.f32 (!%p1447_p13), 0.1, %v1473_v51 }
 0x4d6   : > { %v1100_v40 = vld [vmem:[#allocation2] sm:$0xff]  ;;  %v1101_v41 = vld [vmem:[#allocation2 + $0x8] sm:$0xff] }
 0x4d7   : > { %v1108_v43 = vadd.f32 %v1107_v42, %v1100_v40  ;;  %v1109_v44 = vadd.f32 %v1107_v42, %v1101_v41 }
 0x4d9   : > { %v1110_v45 = vpack.c.bf16 %v1109_v44, %v1108_v43 }
 0x4db   : > { %1555 = vmatmul.mubr.msk.bf16.vlgmr.msra.gmra.mrb[0].mxu0 %vm632_vm1, %v1110_v45 }
 0x5ae   : > { %v1170_v52 = vpop.f32.mrb[0].mxu0 }
 0x5af   : > { %v1171_v53 = vadd.f32 %v1170_v52, %v1120_v49  ;;  %v1556_v55 = vpop.f32.mrb[1].mxu0 }
 0x5b0   : > { %v1173_v56 = vpop.f32.mrb[2].mxu0 }
 0x5b1   : > { %v1181_v57 = vmul.f32 0.9, %v1171_v53  ;;  %v1174_v58 = vadd.f32 %v1173_v56, %v1120_v49  ;;  %v1557_v60 = vpop.f32.mrb[3].mxu0 }
 0x5b3   : > { %v1185_v61 = vadd.f32 %v1183_v54, %v1181_v57  ;;  %v1182_v62 = vmul.f32 0.9, %v1174_v58 }
 0x5b5   : > { %v1468_v63 = vpack.c.bf16 %v1185_v61, %v1185_v61  ;;  %v1186_v1 = vadd.f32 %v1184_v59, %v1182_v62 }
 0x5b7   : > { %1196 = vst.msk [vmem:[#allocation3] sm:$0xf] %vm1195_vm5, %v1468_v63  ;;  %v1469_v2 = vpack.c.bf16 %v1186_v1, %v1186_v1 }
 0x5b9   : > { %1197 = vst.msk [vmem:[#allocation3 + $0x4] sm:$0xf] %vm1195_vm5, %v1469_v2 }
 0x5ba PF: > { %s1762_s30 = smov [#allocation3]  }
 0x5bb   : > { %s1212_s23 = sshll.u32 %s1762_s30, 4  ;;  %s1213_s23 = int_to_ptr.vmem [resolvable:$true] %s1212_s23 }
 0x5bc   : > { %s1647_s16 = scalar_lea.vmem %s1213_s23, 128  ;;  %p1654_p5 = scmp.lt.s32.totalorder %s1213_s23, %s1213_s23 }
 0x5bd   : > { %p1648_p0 = scmp.ne.s32.totalorder %s1213_s23, %s1647_s16  ;;  %p1655_p6 = scmp.lt.s32.totalorder %s1647_s16, %s1647_s16 }
 0x5bf   : > { %p1649_p1 = pnand %p1648_p0, %p1875_p2  ;;  %p1656_p7 = por %p1655_p6, %p1654_p5 }
 0x5c1   : > { %p1650_p3 = pneg %p1649_p1 }
 0x5c3   : > { %p1657_p9 = pnand %p1656_p7, %p1650_p3 }
 0x5c5   : > { %1660 = shalt.err (!%p1657_p9)
}
 0x5c6   : > { %s1661_s24 = scalar_lea.hbm %s2106_s12, 128 }
 0x5c7   : > { %p1662_p10 = scmp.ne.s32.totalorder %s2106_s12, %s1661_s24  ;;  %p1667_p13 = scmp.lt.u32.totalorder %s1661_s24, %s2106_s12 }
 0x5c9   : > { %p1663_p11 = pnand %p1662_p10, %p1875_p2 }
 0x5cb   : > { %p1664_p12 = pneg %p1663_p11 }
 0x5cd   : > { %p1669_p0 = pnand %p1667_p13, %p1664_p12 }
 0x5cf   : > { %1672 = shalt.err (!%p1669_p0)
}
 0x5d0   : > { %s1763_s29 = smov 64   ;;  %s1764_s30 = smov 4  }
 0x5d1   : > { %1559 = dma.vmem_to_hbm [thread:$0]  (%p1875_p2), %s1213_s23, 128, %s2106_s12, [#allocation4], %s1763_s29, %s1763_s29, %s1764_s30  }
 0x5d2   : > { %s1455_s22 = sshll.u32 %s1747_s28, 7  ;;  %s1230_s24 = sshll.u32 %s1975_s20, 4  ;;  %s2040_s24 = int_to_ptr.vmem [resolvable:$true] %s1230_s24 }
 0x5d3   : > { %s2037_s25 = scalar_lea.hbm %s2107_s13, %s1455_s22  ;;  %s2044_s27 = scalar_lea.sflag [#allocation6], %s557_s15 }
 0x5d4   : > { %s1673_s0 = scalar_lea.vmem %s2040_s24, 256  ;;  %s1765_s28 = smov [#allocation5]  }
 0x5d5   : > { %p1674_p1 = scmp.ne.s32.totalorder %s2040_s24, %s1673_s0  ;;  %s1677_s23 = sshll.u32 %s1765_s28, 4  ;;  %s1678_s23 = int_to_ptr.vmem [resolvable:$false] %s1677_s23 }
 0x5d6   : > { %s1679_s29 = scalar_lea.vmem %s1678_s23, 512  ;;  %p1680_p6 = scmp.lt.s32.totalorder %s2040_s24, %s1678_s23 }
 0x5d7   : > { %p1675_p3 = pnand %p1674_p1, %p1885_p4  ;;  %p1681_p7 = scmp.lt.s32.totalorder %s1679_s29, %s1673_s0 }
 0x5d9   : > { %p1676_p5 = pneg %p1675_p3  ;;  %p1682_p9 = por %p1681_p7, %p1680_p6 }
 0x5db   : > { %p1683_p10 = pnand %p1682_p9, %p1676_p5 }
 0x5dd   : > { %1686 = shalt.err (!%p1683_p10)
}
 0x5de   : > { %s1687_s15 = scalar_lea.hbm %s2037_s25, 256  ;;  %s1691_s16 = scalar_lea.hbm %s2107_s13, 1024 }
 0x5df   : > { %p1688_p11 = scmp.ne.s32.totalorder %s2037_s25, %s1687_s15  ;;  %p1692_p0 = scmp.lt.u32.totalorder %s2037_s25, %s2107_s13 }
 0x5e0   : > { %p1693_p1 = scmp.lt.u32.totalorder %s1691_s16, %s1687_s15  ;;  %p1695_p5 = scmp.lt.u32.totalorder %s1687_s15, %s2037_s25 }
 0x5e1   : > { %p1689_p12 = pnand %p1688_p11, %p1885_p4 }
 0x5e2   : > { %p1694_p3 = por %p1693_p1, %p1692_p0 }
 0x5e3   : > { %p1690_p13 = pneg %p1689_p12 }
 0x5e4   : > { %p1696_p6 = por %p1695_p5, %p1694_p3 }
 0x5e6   : > { %p1697_p7 = pnand %p1696_p6, %p1690_p13 }
 0x5e8   : > { %1700 = shalt.err (!%p1697_p7)
}
 0x5e9   : > { %s1766_s0 = smov 128   ;;  %s1767_s14 = smov 512  }
 0x5ea   : > { %s1768_s17 = smov 8  }
 0x5eb   : > { %1560 = dma.vmem_to_hbm [thread:$0]  (%p1885_p4), %s2040_s24, 256, %s2037_s25, %s2044_s27, %s1766_s0, %s1767_s14, %s1768_s17  }
 0x5ec   : > { %1726 = dma.done.wait (%p1875_p2), [#allocation4], 128  }
 0x5ed   : > { %1728 = vsyncadd (%p1875_p2), [#allocation4], 4294967168 }
 0x5ee PF: > { %s2127_s28 = sld [smem:[#allocation12_spill]]  ;;  %s2128_s23 = sld [smem:[#allocation9_spill]] }
 0x5f4   : > { %p1570_p9 = scmp.ge.s32.totalorder %s2127_s28, 2  ;;  %s1249_s15 = sand.u32 1, %s2128_s23  }
 0x5f5   : > { %s1250_s20 = scalar_lea.sflag [#allocation6], %s1249_s15 }
 0x5f6   : > { %p1565_p10 = pnand %p1570_p9, %p1892_p8 }
 0x5f8   : > { %1730 = dma.done.wait (!%p1565_p10), %s1250_s20, 256  }
 0x5f9   : > { %1732 = vsyncadd (!%p1565_p10), %s1250_s20, 4294967040  ;;  %s28_s30 = sadd.s32 1, %s2127_s28   ;;  %s2130_s19 = sld [smem:[#allocation10_spill]] }
 0x5fa   : > { %p25_p11 = scmp.ge.s32.totalorder %s28_s30, 6   ;;  %s2131_s27 = sld [smem:[#allocation15_spill]] }
 0x5fb   : > { %s2132_s28 = sld [smem:[#allocation11_spill]]  ;;  %s2133_s29 = sld [smem:[#allocation13_spill]] }
 0x5fc   : > { %s2134_s25 = smov %s1739_s26  ;;  %27 = sbr.rel (!%p25_p11) target bundleno = 7 (0x7), region = 145 }
 0x5ff   : > { %s2135_s26 = smov %s2130_s19 }
 0x603   :  { %1255 = vsyncpa [#allocation4], 1 }
 0x604   :  { %1257 = vsyncpa [#allocation4 + $0x1], 1 }
 0x605   :  { %1258 = vsyncpa [#allocation6], 1 }
 0x606   :  { %1260 = vsyncpa [#allocation6 + $0x1], 1 }

</bundles_post_ra>
